<compile_context>
chip_gen: v5e
topology: v5e:2x2
jax: 0.10.0
libtpu: 0.0.40
codegen_flags: <defaults>
</compile_context>

<pallas_src>
import functools

import jax
import jax.numpy as jnp
from jax.experimental import pallas as pl
from jax.experimental.pallas import tpu as pltpu

COMPUTE_DTYPE = jnp.bfloat16
VMEM_LIMIT_BYTES = 48 * 1024 * 1024   # <= v7x's 64 MiB physical VMEM per core


# ----------------------------------------------------------------------------
# Tiling helpers
# ----------------------------------------------------------------------------
def _round_up(x, m):
    return (x + m - 1) // m * m


def _pick_cout_tile(cout, tc_max=256):
    if cout <= tc_max:
        return cout
    for t in range(tc_max, 127, -1):
        if cout % t == 0 and t % 128 == 0:
            return t
    return cout


def _pick_row_tile(h, wp, pad, th_max=64):
    """Largest row tile TH (divisor of h) whose flattened blocks satisfy the
    TPU sublane tiling constraints.  Falls back to the full image (TH = h)."""
    if h <= th_max:
        return h
    tail = wp - 2 * pad if pad else 0          # spare elements past the last row
    for t in range(th_max, 0, -1):
        if h % t:
            continue
        need = (t + 2 * pad) * wp + 2 * pad
        if (t * wp) % 16 == 0 and _round_up(need, 16) - need <= tail:
            return t
    return h


# ----------------------------------------------------------------------------
# Pallas conv (+bias, +ReLU) kernel: one big matmul per filter tap
# ----------------------------------------------------------------------------
def _conv_kernel(x_ref, w_ref, b_ref, o_ref, *, TH, Wp, KH, KW, dil, relu):
    """x_ref: (1, >= (TH+2*pad)*Wp + 2*pad, Cin)  flattened padded input rows
       w_ref: (KH, KW, Cin, TC)                   bf16 filter bank tile
       b_ref: (1, TC)                             f32 bias
       o_ref: (1, TH*Wp, TC)                      width-padded output rows
    """
    TC = o_ref.shape[-1]
    M = TH * Wp
    acc = jnp.zeros((M, TC), jnp.float32)
    # One (M, Cin) x (Cin, TC) MXU matmul per filter tap, f32 accumulation.
    for kh in range(KH):
        for kw in range(KW):
            start = (kh * Wp + kw) * dil
            acc = acc + jnp.dot(x_ref[0, start:start + M, :], w_ref[kh, kw],
                                preferred_element_type=jnp.float32)
    acc = acc + b_ref[...]
    if relu:
        acc = jnp.maximum(acc, 0.0)
    o_ref[0] = acc.astype(o_ref.dtype)


def conv2d_pallas(x, w, b, *, dilation=1, relu=True, th_max=64, tc_max=256):
    """x: (N, H, W, Cin), w: (KH, KW, Cin, Cout) (odd square kernel), b: (Cout,).

    Matches nn.Conv2d(padding=dilation*(K//2), dilation=dilation) (+ ReLU).
    Returns (N, H, W, Cout) in COMPUTE_DTYPE.
    """
    x = x.astype(COMPUTE_DTYPE)
    w = w.astype(COMPUTE_DTYPE)
    b = b.astype(jnp.float32).reshape(1, -1)

    N, H, W, Cin = x.shape
    KH, KW, _, Cout = w.shape
    pad = dilation * (KH // 2)
    Wp = W + 2 * pad

    # Spatial halo + one spare zero row (the last output row's tap windows may
    # run a few elements past row Hp-1 in the flattened layout; those elements
    # only feed the discarded width-pad output columns).
    if pad:
        xq = jnp.pad(x, ((0, 0), (pad, pad + 1), (pad, pad), (0, 0)))
    else:
        xq = x
    Lflat = xq.shape[1] * Wp
    xf = xq.reshape(N, Lflat, Cin)

    TH = _pick_row_tile(H, Wp, pad, th_max)
    TC = _pick_cout_tile(Cout, tc_max)
    nR, nC = H // TH, Cout // TC

    if nR == 1:
        in_spec = pl.BlockSpec((1, Lflat, Cin), lambda n, c, r: (n, 0, 0))
    else:
        # Overlapping halo windows -> element-offset indexing on the row axis.
        b_in = _round_up((TH + 2 * pad) * Wp + 2 * pad, 16)
        in_spec = pl.BlockSpec((1, pl.Element(b_in), Cin),
                               lambda n, c, r: (n, r * TH * Wp, 0))

    kernel = functools.partial(_conv_kernel, TH=TH, Wp=Wp, KH=KH, KW=KW,
                               dil=dilation, relu=relu)

    out = pl.pallas_call(
        kernel,
        out_shape=jax.ShapeDtypeStruct((N, H * Wp, Cout), COMPUTE_DTYPE),
        grid_spec=pltpu.PrefetchScalarGridSpec(
            num_scalar_prefetch=0,
            grid=(N, nC, nR),        # row tiles innermost: weights stay resident
            in_specs=[
                in_spec,
                pl.BlockSpec((KH, KW, Cin, TC), lambda n, c, r: (0, 0, 0, c)),
                pl.BlockSpec((1, TC), lambda n, c, r: (0, c)),
            ],
            out_specs=pl.BlockSpec((1, TH * Wp, TC), lambda n, c, r: (n, r, c)),
        ),
        compiler_params=pltpu.CompilerParams(
            dimension_semantics=("parallel", "parallel", "parallel"),
            vmem_limit_bytes=VMEM_LIMIT_BYTES,
        ),
    )(xf, w, b)

    out = out.reshape(N, H, Wp, Cout)
    if pad:
        out = out[:, :, :W, :]       # drop the width-pad (junk) output columns
    return out


# ----------------------------------------------------------------------------
# Plain-JAX glue (cheap data movement, not the FLOP hot path)
# ----------------------------------------------------------------------------
def maxpool2x2(x):  # NHWC, kernel=2, stride=2
    n, h, w, c = x.shape
    return jnp.max(x.reshape(n, h // 2, 2, w // 2, 2, c), axis=(2, 4))


def _im2col_3x3(x):  # (N, H, W, 3) -> (N, H, W, 27), padding=1
    n, h, w, c = x.shape
    xp = jnp.pad(x, ((0, 0), (1, 1), (1, 1), (0, 0)))
    cols = [xp[:, kh:kh + h, kw:kw + w, :] for kh in range(3) for kw in range(3)]
    return jnp.concatenate(cols, axis=-1)


# ----------------------------------------------------------------------------
# Parameters (mirrors _initialize_weights; weights stored HWIO)
# ----------------------------------------------------------------------------
def build_params(key):
    frontend_feat = [64, 64, 'M', 128, 128, 'M', 256, 256, 256, 'M', 512, 512, 512]
    backend_feat = [512, 512, 512, 256, 128, 64]

    def conv_init(key, cin, cout):
        key, wk = jax.random.split(key)
        w = 0.01 * jax.random.normal(wk, (3, 3, cin, cout), dtype=jnp.float32)
        return key, w, jnp.zeros((cout,), jnp.float32)

    front, cin, i = [], 3, 0
    while i < len(frontend_feat):
        v = frontend_feat[i]
        key, w, b = conv_init(key, cin, v)
        pool = i + 1 < len(frontend_feat) and frontend_feat[i + 1] == 'M'
        front.append((w, b, pool))
        cin = v
        i += 2 if pool else 1

    back = []
    for v in backend_feat:
        key, w, b = conv_init(key, cin, v)
        back.append((w, b))
        cin = v

    key, wk = jax.random.split(key)
    w_out = 0.01 * jax.random.normal(wk, (cin, 6), dtype=jnp.float32)  # 1x1 conv
    b_out = jnp.zeros((6,), jnp.float32)
    return front, back, w_out, b_out, key


# ----------------------------------------------------------------------------
# Full forward pass (CSRNetFG_naive.forward)
# ----------------------------------------------------------------------------
def csrnet_forward(x_nchw, front, back, w_out, b_out):
    x = jnp.transpose(x_nchw, (0, 2, 3, 1)).astype(COMPUTE_DTYPE)  # NCHW -> NHWC

    # First frontend conv (Cin=3): im2col -> single (H*W, 27) x (27, 64) matmul.
    w0, b0, pool0 = front[0]
    x = conv2d_pallas(_im2col_3x3(x), w0.reshape(1, 1, 27, -1), b0, dilation=1)
    if pool0:
        x = maxpool2x2(x)

    # Remaining frontend: 3x3 conv + ReLU (+ 2x2 maxpool where cfg says 'M').
    for w, b, pool in front[1:]:
        x = conv2d_pallas(x, w, b, dilation=1)
        if pool:
            x = maxpool2x2(x)

    # Backend: dilated (rate-2) 3x3 conv + ReLU.
    for w, b in back:
        x = conv2d_pallas(x, w, b, dilation=2)

    # Output 1x1 conv (Cout=6, no activation) + F.interpolate(scale_factor=8),
    # kept in plain JAX to avoid 6-lane-wide masked stores in Pallas.
    x = jnp.einsum('nhwc,co->nhwo', x.astype(jnp.float32), w_out) + b_out
    x = jnp.repeat(jnp.repeat(x, 8, axis=1), 8, axis=2)
    return jnp.transpose(x, (0, 3, 1, 2))                         # NHWC -> NCHW


# ----------------------------------------------------------------------------
# Pure-JAX reference (same per-layer bf16 casts) for a correctness cross-check
# ----------------------------------------------------------------------------
def _conv_ref(x, w, b, dilation):
    p = dilation
    y = jax.lax.conv_general_dilated(
        x.astype(COMPUTE_DTYPE), w.astype(COMPUTE_DTYPE),
        window_strides=(1, 1), padding=((p, p), (p, p)),
        rhs_dilation=(dilation, dilation),
        dimension_numbers=('NHWC', 'HWIO', 'NHWC'),
        preferred_element_type=jnp.float32)
    y = jnp.maximum(y + b, 0.0)
    return y.astype(COMPUTE_DTYPE)


def csrnet_reference(x_nchw, front, back, w_out, b_out):
    x = jnp.transpose(x_nchw, (0, 2, 3, 1)).astype(COMPUTE_DTYPE)
    for w, b, pool in front:
        x = _conv_ref(x, w, b, 1)
        if pool:
            x = maxpool2x2(x)
    for w, b in back:
        x = _conv_ref(x, w, b, 2)
    x = jnp.einsum('nhwc,co->nhwo', x.astype(jnp.float32), w_out) + b_out
    x = jnp.repeat(jnp.repeat(x, 8, axis=1), 8, axis=2)
    return jnp.transpose(x, (0, 3, 1, 2))


# ----------------------------------------------------------------------------
if __name__ == "__main__":
    key = jax.random.PRNGKey(0)
    front, back, w_out, b_out, key = build_params(key)

    key, xk = jax.random.split(key)
    # Small input consistent with the module: batch=2, RGB, 16x16
    # (3 maxpools -> 2x2 backend feature map; x8 upsample -> 16x16 output).
    x = jax.random.normal(xk, (2, 3, 16, 16), dtype=jnp.float32)

    out = jax.block_until_ready(csrnet_forward(x, front, back, w_out, b_out))
    assert out.shape == (2, 6, 16, 16), out.shape
    assert bool(jnp.all(jnp.isfinite(out)))

    ref = jax.block_until_ready(csrnet_reference(x, front, back, w_out, b_out))
    rel = float(jnp.max(jnp.abs(out - ref)) / (jnp.max(jnp.abs(ref)) + 1e-30))
    assert rel < 0.1, f"relative error too large: {rel}"

    print("KERNEL_OK")
</pallas_src>

<mosaic_0001>
module attributes {stable_mosaic.version = 11 : i64} {
  func.func @_conv_kernel(%arg0: i32, %arg1: i32, %arg2: i32, %arg3: memref<1x256x27xbf16, #tpu.memory_space<vmem>>, %arg4: memref<1x1x27x64xbf16, #tpu.memory_space<vmem>>, %arg5: memref<1x64xf32, #tpu.memory_space<vmem>>, %arg6: memref<1x256x64xbf16, #tpu.memory_space<vmem>>) attributes {dimension_semantics = [#tpu.dimension_semantics<parallel>, #tpu.dimension_semantics<parallel>, #tpu.dimension_semantics<parallel>], iteration_bounds = array<i64: 2, 1, 1>, scalar_prefetch = 0 : i64, scratch_operands = 0 : i64, tpu.core_type = #tpu.core_type<tc>, window_params = [{transform_indices = @transform_0, window_bounds = array<i64: 1, 256, 27>}, {transform_indices = @transform_1, window_bounds = array<i64: 1, 1, 27, 64>}, {transform_indices = @transform_2, window_bounds = array<i64: 1, 64>}, {transform_indices = @transform_3, window_bounds = array<i64: 1, 256, 64>}]} {
    %cst = arith.constant 0.000000e+00 : f32
    %0 = vector.broadcast %cst : f32 to vector<256x64xf32>
    %c0 = arith.constant 0 : index
    %c0_0 = arith.constant 0 : index
    %c0_1 = arith.constant 0 : index
    %1 = vector.load %arg3[%c0, %c0_0, %c0_1] : memref<1x256x27xbf16, #tpu.memory_space<vmem>>, vector<1x256x27xbf16>
    %2 = vector.shape_cast %1 : vector<1x256x27xbf16> to vector<256x27xbf16>
    %c0_2 = arith.constant 0 : index
    %c0_3 = arith.constant 0 : index
    %c0_4 = arith.constant 0 : index
    %c0_5 = arith.constant 0 : index
    %3 = vector.load %arg4[%c0_2, %c0_3, %c0_4, %c0_5] : memref<1x1x27x64xbf16, #tpu.memory_space<vmem>>, vector<1x1x27x64xbf16>
    %4 = vector.shape_cast %3 : vector<1x1x27x64xbf16> to vector<27x64xbf16>
    %cst_6 = arith.constant dense<0.000000e+00> : vector<256x64xf32>
    %5 = tpu.matmul %2, %4, %cst_6 {dimension_numbers = #tpu.dot_dimension_numbers<[1], [0], [0], [1], [0, 0, 1, 1], [], []>} : vector<256x27xbf16>, vector<27x64xbf16>, vector<256x64xf32> -> vector<256x64xf32>
    %6 = arith.addf %0, %5 : vector<256x64xf32>
    %c0_7 = arith.constant 0 : index
    %c0_8 = arith.constant 0 : index
    %7 = vector.load %arg5[%c0_7, %c0_8] : memref<1x64xf32, #tpu.memory_space<vmem>>, vector<1x64xf32>
    %8 = vector.broadcast %7 : vector<1x64xf32> to vector<256x64xf32>
    %9 = arith.addf %6, %8 : vector<256x64xf32>
    %cst_9 = arith.constant 0.000000e+00 : f32
    %10 = vector.broadcast %cst_9 : f32 to vector<256x64xf32>
    %11 = arith.maximumf %9, %10 : vector<256x64xf32>
    %12 = arith.truncf %11 : vector<256x64xf32> to vector<256x64xbf16>
    %c0_10 = arith.constant 0 : index
    %c0_11 = arith.constant 0 : index
    %c0_12 = arith.constant 0 : index
    %13 = vector.load %arg6[%c0_10, %c0_11, %c0_12] : memref<1x256x64xbf16, #tpu.memory_space<vmem>>, vector<1x256x64xbf16>
    %14 = vector.shape_cast %13 : vector<1x256x64xbf16> to vector<256x64xbf16>
    %15 = vector.shape_cast %12 : vector<256x64xbf16> to vector<1x256x64xbf16>
    tpu.vector_store %arg6[%c0_10, %c0_11, %c0_12], %15 {strides = array<i32>} : memref<1x256x64xbf16, #tpu.memory_space<vmem>>, vector<1x256x64xbf16>,
    return
  }
  func.func @transform_0(%arg0: i32, %arg1: i32, %arg2: i32) -> (i32, i32, i32) {
    %c0_i32 = arith.constant 0 : i32
    %c0_i32_0 = arith.constant 0 : i32
    %c0_i32_1 = arith.constant 0 : i32
    return %arg0, %c0_i32, %c0_i32_0 : i32, i32, i32
  }
  func.func @transform_1(%arg0: i32, %arg1: i32, %arg2: i32) -> (i32, i32, i32, i32) {
    %c0_i32 = arith.constant 0 : i32
    %c0_i32_0 = arith.constant 0 : i32
    %c0_i32_1 = arith.constant 0 : i32
    %c0_i32_2 = arith.constant 0 : i32
    return %c0_i32, %c0_i32_0, %c0_i32_1, %arg1 : i32, i32, i32, i32
  }
  func.func @transform_2(%arg0: i32, %arg1: i32, %arg2: i32) -> (i32, i32) {
    %c0_i32 = arith.constant 0 : i32
    %c0_i32_0 = arith.constant 0 : i32
    return %c0_i32, %arg1 : i32, i32
  }
  func.func @transform_3(%arg0: i32, %arg1: i32, %arg2: i32) -> (i32, i32, i32) {
    %c0_i32 = arith.constant 0 : i32
    return %arg0, %arg2, %arg1 : i32, i32, i32
  }
}

</mosaic_0001>

<bundles_post_ra>
// kernel: tpu_custom_call.1
= control target key start
LH: loop header
LB: loop body
LE: loop exit
PB: predicated region body
PF: predicated region fallthrough
CT: control target
= control target key end

     0   :  { %s933_s12 = smov 0   ;;  %s935_s13 = smov 0   ;;  %s1119_s0 = inlined_call_operand.vmem [shape: bf16[2,256,27], index: 0, kind: input, shape index: {}]   ;;  %s1120_s1 = inlined_call_operand.vmem [shape: bf16[1,1,27,64], index: 1, kind: input, shape index: {}]   ;;  %s1121_s2 = inlined_call_operand.vmem [shape: f32[1,64], index: 2, kind: input, shape index: {}]   ;;  %s1122_s3 = inlined_call_operand.vmem [shape: bf16[2,256,64], index: 3, kind: output, shape index: {}]  }
   0x1   :  { %s937_s14 = smov 0  }
   0x2 LB: > { %s32_s15 = sadd.s32 1, %s906_s13  ;;  %p741_p0 = scmp.ge.s32.totalorder %s910_s14, 1  ;;  %s910_s14 = sphi %s937_s14, %s13_s14   ;;  %s906_s13 = sphi %s935_s13, %s1124_s13   ;;  %s902_s12 = sphi %s933_s12, %s1123_s12  }
   0x3   : > { %p34_p1 = scmp.ge.s32.totalorder %s32_s15, 2  ;;  %p177_p2 = scmp.lt.s32.totalorder %s910_s14, 3 }
   0x5   : > { %s1126_s15 = smov (%p34_p1, %s32_s15), 0  ;;  %p178_p3 = pnand %p741_p0, %p177_p2 }
   0x6   : > { %p215_p4 = scmp.lt.s32.totalorder (!%p178_p3), %s902_s12, 1 }
   0x7   : > { %181 = sbr.rel (%p178_p3) target bundleno = 222 (0xde), region = 32 }
   0xc   : > { %v816_v0 = vld [vmem:[%s1120_s1 + $0x8] sm:$0xf]  ;;  %v855_v1 = vld [vmem:[%s1120_s1 + $0x8] sm:$0x30]  ;;  %vm421_vm0 = vcmask 1044480   ;;  %vm422_vm1 = vcmask 1045504  }
   0xd   : > { %v817_v2 = vor.u32 %v855_v1, %v816_v0  ;;  %v912_v3 = vmov 65535   ;;  %s1128_s12 = smov (!%p215_p4, %s902_s12), 1  ;;  %v854_v7 = vld [vmem:[%s1120_s1] sm:$0xff]  ;;  %vm372_vm2 = vcmask 220160   ;;  %vm581_vm3 = vcmask 519168  }
   0xe   : > { %v423_v4 = vsel %vm421_vm0, 4294967295, %v912_v3  ;;  %s836_s20 = sshll.u32 %s1128_s12, 7  ;;  %v1005_v24 = vld [vmem:[%s1121_s2] ss:$0 sm:$0xff] }
   0xf   : > { %v424_v5 = vsel %vm422_vm1, %v423_v4, 0  ;;  %s968_s25 = scalar_lea.vmem %s1119_s0, %s836_s20  ;;  %s1014_s30 = scalar_lea.vmem %s1122_s3, %s836_s20 }
  0x10   : > { %v426_v6 = vand.u32 %v817_v2, %v424_v5  ;;  %v838_v8 = vld [vmem:[%s968_s25] sm:$0xff]  ;;  %v839_v12 = vld [vmem:[%s968_s25 + $0x8] sm:$0xff]  ;;  %v840_v16 = vld [vmem:[%s968_s25 + $0x10] sm:$0xff] }
  0x11   : > { %v842_v9 = vld [vmem:[%s968_s25 + $0x20] sm:$0xff]  ;;  %v843_v13 = vld [vmem:[%s968_s25 + $0x28] sm:$0xff]  ;;  %v844_v17 = vld [vmem:[%s968_s25 + $0x30] sm:$0xff] }
  0x12   : > { %434 = vmatpush.bf16.msra.mxu0 %v426_v6  ;;  %856 = vmatpush.bf16.msra.mxu1 %v426_v6  ;;  %v846_v10 = vld [vmem:[%s968_s25 + $0x40] sm:$0xff]  ;;  %v847_v14 = vld [vmem:[%s968_s25 + $0x48] sm:$0xff]  ;;  %v848_v18 = vld [vmem:[%s968_s25 + $0x50] sm:$0xff] }
  0x13   : > { %857 = vmatpush.bf16.msra.mxu2 %v426_v6  ;;  %858 = vmatpush.bf16.msra.mxu3 %v426_v6  ;;  %v850_v11 = vld [vmem:[%s968_s25 + $0x60] sm:$0xff]  ;;  %v851_v15 = vld [vmem:[%s968_s25 + $0x68] sm:$0xff]  ;;  %v852_v19 = vld [vmem:[%s968_s25 + $0x70] sm:$0xff] }
  0x14   : > { %v841_v20 = vld [vmem:[%s968_s25 + $0x18] sm:$0xff] }
  0x15   : > { %v845_v21 = vld [vmem:[%s968_s25 + $0x38] sm:$0xff] }
  0x16   : > { %435 = vmatpush.bf16.msra.mxu0 %v854_v7  ;;  %859 = vmatpush.bf16.msra.mxu1 %v854_v7  ;;  %v849_v22 = vld [vmem:[%s968_s25 + $0x58] sm:$0xff] }
  0x17   : > { %860 = vmatpush.bf16.msra.mxu2 %v854_v7  ;;  %861 = vmatpush.bf16.msra.mxu3 %v854_v7  ;;  %v853_v23 = vld [vmem:[%s968_s25 + $0x78] sm:$0xff] }
  0x19   : > { %818 = vmatmul.msk.bf16.vlgmr.msra.gmra.mxu0 %vm372_vm2, %v838_v8  ;;  %822 = vmatmul.msk.bf16.vlgmr.msra.gmra.mxu1 %vm372_vm2, %v842_v9 }
  0x1a   : > { %826 = vmatmul.msk.bf16.vlgmr.msra.gmra.mxu2 %vm372_vm2, %v846_v10  ;;  %830 = vmatmul.msk.bf16.vlgmr.msra.gmra.mxu3 %vm372_vm2, %v850_v11 }
  0x29   : > { %819 = vmatmul.msk.bf16.gmra.mxu0 %vm372_vm2, %v839_v12  ;;  %823 = vmatmul.msk.bf16.gmra.mxu1 %vm372_vm2, %v843_v13 }
  0x2a   : > { %827 = vmatmul.msk.bf16.gmra.mxu2 %vm372_vm2, %v847_v14  ;;  %831 = vmatmul.msk.bf16.gmra.mxu3 %vm372_vm2, %v851_v15 }
  0x39   : > { %820 = vmatmul.msk.bf16.gmra.mxu0 %vm372_vm2, %v840_v16  ;;  %824 = vmatmul.msk.bf16.gmra.mxu1 %vm372_vm2, %v844_v17 }
  0x3a   : > { %828 = vmatmul.msk.bf16.gmra.mxu2 %vm372_vm2, %v848_v18  ;;  %832 = vmatmul.msk.bf16.gmra.mxu3 %vm372_vm2, %v852_v19 }
  0x49   : > { %821 = vmatmul.msk.bf16.gmra.mxu0 %vm372_vm2, %v841_v20  ;;  %825 = vmatmul.msk.bf16.gmra.mxu1 %vm372_vm2, %v845_v21 }
  0x4a   : > { %829 = vmatmul.msk.bf16.gmra.mxu2 %vm372_vm2, %v849_v22  ;;  %833 = vmatmul.msk.bf16.gmra.mxu3 %vm372_vm2, %v853_v23 }
  0x96   : > { %v437_v25 = vpop.f32.mrf.mxu0  ;;  %v457_v26 = vpop.f32.mrf.mxu1 }
  0x97   : > { %v438_v27 = vadd.f32 %v1005_v24, %v437_v25  ;;  %v458_v28 = vadd.f32 %v1005_v24, %v457_v26 }
  0x99   : > { %v517_v29 = vmax.f32 %v438_v27, 0.0  ;;  %v525_v30 = vmax.f32 %v458_v28, 0.0 }
  0x9b   : > { %v549_v31 = vpack.c.bf16 %v517_v29, %v517_v29  ;;  %v557_v32 = vpack.c.bf16 %v525_v30, %v525_v30 }
  0x9d   : > { %582 = vst.msk [vmem:[%s1014_s30] sm:$0xf] %vm581_vm3, %v549_v31  ;;  %v477_v33 = vpop.f32.mrf.mxu2  ;;  %v497_v34 = vpop.f32.mrf.mxu3 }
  0x9e   : > { %590 = vst.msk [vmem:[%s1014_s30 + $0x20] sm:$0xf] %vm581_vm3, %v557_v32  ;;  %v478_v35 = vadd.f32 %v1005_v24, %v477_v33  ;;  %v498_v36 = vadd.f32 %v1005_v24, %v497_v34  ;;  %v439_v37 = vpop.f32.mrf.mxu0  ;;  %v459_v38 = vpop.f32.mrf.mxu1 }
  0x9f   : > { %v440_v39 = vadd.f32 %v1005_v24, %v439_v37  ;;  %v460_v40 = vadd.f32 %v1005_v24, %v459_v38 }
  0xa0   : > { %v533_v41 = vmax.f32 %v478_v35, 0.0  ;;  %v541_v42 = vmax.f32 %v498_v36, 0.0 }
  0xa1   : > { %v518_v43 = vmax.f32 %v440_v39, 0.0  ;;  %v526_v44 = vmax.f32 %v460_v40, 0.0 }
  0xa2   : > { %v565_v45 = vpack.c.bf16 %v533_v41, %v533_v41  ;;  %v573_v46 = vpack.c.bf16 %v541_v42, %v541_v42 }
  0xa3   : > { %v550_v47 = vpack.c.bf16 %v518_v43, %v518_v43  ;;  %v558_v48 = vpack.c.bf16 %v526_v44, %v526_v44 }
  0xa4   : > { %598 = vst.msk [vmem:[%s1014_s30 + $0x40] sm:$0xf] %vm581_vm3, %v565_v45 }
  0xa5   : > { %606 = vst.msk [vmem:[%s1014_s30 + $0x60] sm:$0xf] %vm581_vm3, %v573_v46  ;;  %v479_v49 = vpop.f32.mrf.mxu2  ;;  %v499_v50 = vpop.f32.mrf.mxu3 }
  0xa6   : > { %583 = vst.msk [vmem:[%s1014_s30 + $0x4] sm:$0xf] %vm581_vm3, %v550_v47  ;;  %v480_v51 = vadd.f32 %v1005_v24, %v479_v49  ;;  %v500_v52 = vadd.f32 %v1005_v24, %v499_v50  ;;  %v442_v53 = vpop.f32.mrf.mxu0  ;;  %v462_v54 = vpop.f32.mrf.mxu1 }
  0xa7   : > { %591 = vst.msk [vmem:[%s1014_s30 + $0x24] sm:$0xf] %vm581_vm3, %v558_v48  ;;  %v443_v55 = vadd.f32 %v1005_v24, %v442_v53  ;;  %v463_v56 = vadd.f32 %v1005_v24, %v462_v54 }
  0xa8   : > { %v534_v57 = vmax.f32 %v480_v51, 0.0  ;;  %v542_v58 = vmax.f32 %v500_v52, 0.0 }
  0xa9   : > { %v519_v59 = vmax.f32 %v443_v55, 0.0  ;;  %v527_v60 = vmax.f32 %v463_v56, 0.0 }
  0xaa   : > { %v566_v61 = vpack.c.bf16 %v534_v57, %v534_v57  ;;  %v574_v62 = vpack.c.bf16 %v542_v58, %v542_v58 }
  0xab   : > { %v551_v63 = vpack.c.bf16 %v519_v59, %v519_v59  ;;  %v559_v0 = vpack.c.bf16 %v527_v60, %v527_v60 }
  0xac   : > { %599 = vst.msk [vmem:[%s1014_s30 + $0x44] sm:$0xf] %vm581_vm3, %v566_v61 }
  0xad   : > { %607 = vst.msk [vmem:[%s1014_s30 + $0x64] sm:$0xf] %vm581_vm3, %v574_v62  ;;  %v482_v1 = vpop.f32.mrf.mxu2  ;;  %v502_v2 = vpop.f32.mrf.mxu3 }
  0xae   : > { %584 = vst.msk [vmem:[%s1014_s30 + $0x8] sm:$0xf] %vm581_vm3, %v551_v63  ;;  %v483_v3 = vadd.f32 %v1005_v24, %v482_v1  ;;  %v503_v4 = vadd.f32 %v1005_v24, %v502_v2  ;;  %v444_v5 = vpop.f32.mrf.mxu0  ;;  %v464_v6 = vpop.f32.mrf.mxu1 }
  0xaf   : > { %592 = vst.msk [vmem:[%s1014_s30 + $0x28] sm:$0xf] %vm581_vm3, %v559_v0  ;;  %v445_v7 = vadd.f32 %v1005_v24, %v444_v5  ;;  %v465_v8 = vadd.f32 %v1005_v24, %v464_v6 }
  0xb0   : > { %v535_v9 = vmax.f32 %v483_v3, 0.0  ;;  %v543_v10 = vmax.f32 %v503_v4, 0.0 }
  0xb1   : > { %v520_v11 = vmax.f32 %v445_v7, 0.0  ;;  %v528_v12 = vmax.f32 %v465_v8, 0.0 }
  0xb2   : > { %v567_v13 = vpack.c.bf16 %v535_v9, %v535_v9  ;;  %v575_v14 = vpack.c.bf16 %v543_v10, %v543_v10 }
  0xb3   : > { %v552_v15 = vpack.c.bf16 %v520_v11, %v520_v11  ;;  %v560_v16 = vpack.c.bf16 %v528_v12, %v528_v12 }
  0xb4   : > { %600 = vst.msk [vmem:[%s1014_s30 + $0x48] sm:$0xf] %vm581_vm3, %v567_v13 }
  0xb5   : > { %608 = vst.msk [vmem:[%s1014_s30 + $0x68] sm:$0xf] %vm581_vm3, %v575_v14  ;;  %v484_v17 = vpop.f32.mrf.mxu2  ;;  %v504_v18 = vpop.f32.mrf.mxu3 }
  0xb6   : > { %585 = vst.msk [vmem:[%s1014_s30 + $0xc] sm:$0xf] %vm581_vm3, %v552_v15  ;;  %v485_v19 = vadd.f32 %v1005_v24, %v484_v17  ;;  %v505_v20 = vadd.f32 %v1005_v24, %v504_v18  ;;  %v447_v21 = vpop.f32.mrf.mxu0  ;;  %v467_v22 = vpop.f32.mrf.mxu1 }
  0xb7   : > { %593 = vst.msk [vmem:[%s1014_s30 + $0x2c] sm:$0xf] %vm581_vm3, %v560_v16  ;;  %v448_v23 = vadd.f32 %v1005_v24, %v447_v21  ;;  %v468_v25 = vadd.f32 %v1005_v24, %v467_v22 }
  0xb8   : > { %v536_v26 = vmax.f32 %v485_v19, 0.0  ;;  %v544_v27 = vmax.f32 %v505_v20, 0.0 }
  0xb9   : > { %v521_v28 = vmax.f32 %v448_v23, 0.0  ;;  %v529_v29 = vmax.f32 %v468_v25, 0.0 }
  0xba   : > { %v568_v30 = vpack.c.bf16 %v536_v26, %v536_v26  ;;  %v576_v31 = vpack.c.bf16 %v544_v27, %v544_v27 }
  0xbb   : > { %v553_v32 = vpack.c.bf16 %v521_v28, %v521_v28  ;;  %v561_v33 = vpack.c.bf16 %v529_v29, %v529_v29 }
  0xbc   : > { %601 = vst.msk [vmem:[%s1014_s30 + $0x4c] sm:$0xf] %vm581_vm3, %v568_v30 }
  0xbd   : > { %609 = vst.msk [vmem:[%s1014_s30 + $0x6c] sm:$0xf] %vm581_vm3, %v576_v31  ;;  %v487_v34 = vpop.f32.mrf.mxu2  ;;  %v507_v35 = vpop.f32.mrf.mxu3 }
  0xbe   : > { %586 = vst.msk [vmem:[%s1014_s30 + $0x10] sm:$0xf] %vm581_vm3, %v553_v32  ;;  %v488_v36 = vadd.f32 %v1005_v24, %v487_v34  ;;  %v508_v37 = vadd.f32 %v1005_v24, %v507_v35  ;;  %v449_v38 = vpop.f32.mrf.mxu0  ;;  %v469_v39 = vpop.f32.mrf.mxu1 }
  0xbf   : > { %594 = vst.msk [vmem:[%s1014_s30 + $0x30] sm:$0xf] %vm581_vm3, %v561_v33  ;;  %v450_v40 = vadd.f32 %v1005_v24, %v449_v38  ;;  %v470_v41 = vadd.f32 %v1005_v24, %v469_v39 }
  0xc0   : > { %v537_v42 = vmax.f32 %v488_v36, 0.0  ;;  %v545_v43 = vmax.f32 %v508_v37, 0.0 }
  0xc1   : > { %v522_v44 = vmax.f32 %v450_v40, 0.0  ;;  %v530_v45 = vmax.f32 %v470_v41, 0.0 }
  0xc2   : > { %v569_v46 = vpack.c.bf16 %v537_v42, %v537_v42  ;;  %v577_v47 = vpack.c.bf16 %v545_v43, %v545_v43 }
  0xc3   : > { %v554_v48 = vpack.c.bf16 %v522_v44, %v522_v44  ;;  %v562_v49 = vpack.c.bf16 %v530_v45, %v530_v45 }
  0xc4   : > { %602 = vst.msk [vmem:[%s1014_s30 + $0x50] sm:$0xf] %vm581_vm3, %v569_v46 }
  0xc5   : > { %610 = vst.msk [vmem:[%s1014_s30 + $0x70] sm:$0xf] %vm581_vm3, %v577_v47  ;;  %v489_v50 = vpop.f32.mrf.mxu2  ;;  %v509_v51 = vpop.f32.mrf.mxu3 }
  0xc6   : > { %587 = vst.msk [vmem:[%s1014_s30 + $0x14] sm:$0xf] %vm581_vm3, %v554_v48  ;;  %v490_v52 = vadd.f32 %v1005_v24, %v489_v50  ;;  %v510_v53 = vadd.f32 %v1005_v24, %v509_v51  ;;  %v452_v54 = vpop.f32.mrf.mxu0  ;;  %v472_v55 = vpop.f32.mrf.mxu1 }
  0xc7   : > { %595 = vst.msk [vmem:[%s1014_s30 + $0x34] sm:$0xf] %vm581_vm3, %v562_v49  ;;  %v453_v56 = vadd.f32 %v1005_v24, %v452_v54  ;;  %v473_v57 = vadd.f32 %v1005_v24, %v472_v55 }
  0xc8   : > { %v538_v58 = vmax.f32 %v490_v52, 0.0  ;;  %v546_v59 = vmax.f32 %v510_v53, 0.0 }
  0xc9   : > { %v523_v60 = vmax.f32 %v453_v56, 0.0  ;;  %v531_v61 = vmax.f32 %v473_v57, 0.0 }
  0xca   : > { %v570_v62 = vpack.c.bf16 %v538_v58, %v538_v58  ;;  %v578_v63 = vpack.c.bf16 %v546_v59, %v546_v59 }
  0xcb   : > { %v555_v0 = vpack.c.bf16 %v523_v60, %v523_v60  ;;  %v563_v1 = vpack.c.bf16 %v531_v61, %v531_v61 }
  0xcc   : > { %603 = vst.msk [vmem:[%s1014_s30 + $0x54] sm:$0xf] %vm581_vm3, %v570_v62 }
  0xcd   : > { %611 = vst.msk [vmem:[%s1014_s30 + $0x74] sm:$0xf] %vm581_vm3, %v578_v63  ;;  %v492_v2 = vpop.f32.mrf.mxu2  ;;  %v512_v3 = vpop.f32.mrf.mxu3 }
  0xce   : > { %588 = vst.msk [vmem:[%s1014_s30 + $0x18] sm:$0xf] %vm581_vm3, %v555_v0  ;;  %v493_v4 = vadd.f32 %v1005_v24, %v492_v2  ;;  %v513_v5 = vadd.f32 %v1005_v24, %v512_v3  ;;  %v454_v6 = vpop.f32.mrf.mxu0  ;;  %v474_v7 = vpop.f32.mrf.mxu1 }
  0xcf   : > { %596 = vst.msk [vmem:[%s1014_s30 + $0x38] sm:$0xf] %vm581_vm3, %v563_v1  ;;  %v455_v8 = vadd.f32 %v1005_v24, %v454_v6  ;;  %v475_v9 = vadd.f32 %v1005_v24, %v474_v7 }
  0xd0   : > { %v539_v10 = vmax.f32 %v493_v4, 0.0  ;;  %v547_v11 = vmax.f32 %v513_v5, 0.0 }
  0xd1   : > { %v524_v12 = vmax.f32 %v455_v8, 0.0  ;;  %v532_v13 = vmax.f32 %v475_v9, 0.0 }
  0xd2   : > { %v571_v14 = vpack.c.bf16 %v539_v10, %v539_v10  ;;  %v579_v15 = vpack.c.bf16 %v547_v11, %v547_v11 }
  0xd3   : > { %v556_v16 = vpack.c.bf16 %v524_v12, %v524_v12  ;;  %v564_v17 = vpack.c.bf16 %v532_v13, %v532_v13 }
  0xd4   : > { %604 = vst.msk [vmem:[%s1014_s30 + $0x58] sm:$0xf] %vm581_vm3, %v571_v14 }
  0xd5   : > { %612 = vst.msk [vmem:[%s1014_s30 + $0x78] sm:$0xf] %vm581_vm3, %v579_v15  ;;  %v494_v18 = vpop.f32.mrf.mxu2  ;;  %v514_v19 = vpop.f32.mrf.mxu3 }
  0xd6   : > { %589 = vst.msk [vmem:[%s1014_s30 + $0x1c] sm:$0xf] %vm581_vm3, %v556_v16  ;;  %v495_v20 = vadd.f32 %v1005_v24, %v494_v18  ;;  %v515_v21 = vadd.f32 %v1005_v24, %v514_v19 }
  0xd7   : > { %597 = vst.msk [vmem:[%s1014_s30 + $0x3c] sm:$0xf] %vm581_vm3, %v564_v17 }
  0xd8   : > { %v540_v22 = vmax.f32 %v495_v20, 0.0  ;;  %v548_v23 = vmax.f32 %v515_v21, 0.0 }
  0xda   : > { %v572_v25 = vpack.c.bf16 %v540_v22, %v540_v22  ;;  %v580_v26 = vpack.c.bf16 %v548_v23, %v548_v23 }
  0xdc   : > { %605 = vst.msk [vmem:[%s1014_s30 + $0x5c] sm:$0xf] %vm581_vm3, %v572_v25 }
  0xdd   : > { %613 = vst.msk [vmem:[%s1014_s30 + $0x7c] sm:$0xf] %vm581_vm3, %v580_v26 }
  0xde PF: > { %s13_s14 = sadd.s32 1, %s910_s14   ;;  %s1123_s12 = smov %s906_s13 }
  0xdf   : > { %p10_p5 = scmp.ge.s32.totalorder %s13_s14, 4   ;;  %s1124_s13 = smov %s1126_s15 }
  0xe1   :  { %12 = sbr.rel (!%p10_p5) target bundleno = 2 (0x2), region = 68 }

</bundles_post_ra>
